<compile_context>
chip_gen: v6e
topology: v6e:2x2x1
jax: 0.10.0
libtpu: 0.0.40
codegen_flags: <defaults>
</compile_context>

<pallas_src>
import functools

import numpy as np
import jax
import jax.numpy as jnp
from jax.experimental import pallas as pl
from jax.experimental.pallas import tpu as pltpu


def _freq_filter_matrix(C: int) -> np.ndarray:
    """Real C x C matrix T with  T @ x == Re(ifft(mask * fft(x)))  for real x."""
    idx = np.arange(C)
    F = np.exp(-2j * np.pi * np.outer(idx, idx) / C)          # F[c, k]
    mask = (idx >= C // 4).astype(np.complex128)              # zero first C//4 bins
    Tc = (np.conj(F) * mask[None, :]) @ F.T / C
    return np.real(Tc).astype(np.float32)


def _build_band_weight(wf: np.ndarray, TW: int, KBp: int) -> np.ndarray:
    """One banded weight block shared by every TW-pixel output group.

    Rows index (w_local + dw)*C + ci of the (TW+2)-pixel input window (per dh plane),
    cols index w_local*Cout + co.  Identical for every group (translation invariance).
    """
    Cout, C, KH, KW = wf.shape
    TN = TW * Cout
    Wb = np.zeros((KH, KBp, TN), np.float32)
    for dh in range(KH):
        for dw in range(KW):
            blk = wf[:, :, dh, dw].T                          # (C, Cout)
            for wl in range(TW):
                r0 = (wl + dw) * C
                Wb[dh, r0:r0 + C, wl * Cout:(wl + 1) * Cout] = blk
    return Wb


def _hfrfc_kernel(xw_ref, w_ref, b_ref, o_ref, *, KH, H):
    # xw_ref: (NB, H+2, KBp) bf16   -- one (TW+2)-pixel-wide input window per tile
    # w_ref : (KH, KBp, TN) bf16    -- banded weight (T + BN-scale folded in), resident
    # b_ref : (1, 1, TN)   f32      -- folded BN bias, tiled per output pixel
    # o_ref : (NB, H, TN)  f32
    acc = None
    for dh in range(KH):                                      # KH accumulating MXU dots
        lhs = xw_ref[:, pl.ds(dh, H), :]                      # (NB, H, KBp)
        part = jax.lax.dot_general(
            lhs, w_ref[dh],
            dimension_numbers=(((2,), (0,)), ((), ())),
            preferred_element_type=jnp.float32)               # (NB, H, TN)
        acc = part if acc is None else acc + part
    o_ref[...] = jnp.maximum(acc + b_ref[...], 0.0)


def hfrfc_block(x_nchw, T, w_oihw, gamma, beta, run_mean, run_var, eps=1e-5):
    N, C, H, W = x_nchw.shape
    Cout, _, KH, KW = w_oihw.shape

    # ---- offline parameter folding (plain numpy, concrete params only) ----
    # TODO(synk): folding uses numpy; calling under jit with traced parameters would
    # require a jnp rewrite of this section.
    T_np = np.asarray(T, np.float32)
    w_np = np.asarray(w_oihw, np.float32)
    scale_np = np.asarray(gamma, np.float32) / np.sqrt(np.asarray(run_var, np.float32) + eps)
    bias_np = np.asarray(beta, np.float32) - np.asarray(run_mean, np.float32) * scale_np
    # y = relu( x_pad ⊛ (scale * (w · T)) + bias )
    wf = np.einsum('oihw,ij->ojhw', w_np, T_np) * scale_np[:, None, None, None]

    # ---- tiling choices ----
    # TW: smallest divisor of W whose output-column width TW*Cout is lane-dense (>=128).
    TW = W
    for cand in range(1, W + 1):
        if W % cand == 0 and cand * Cout >= 128:
            TW = cand
            break
    Wt = W // TW
    TN = TW * Cout
    KB = (TW + 2) * C
    KBp = ((KB + 127) // 128) * 128                           # lane-align the band

    # NB: largest divisor of N with M = NB*H <= 1024, subject to a VMEM budget.
    NB = 1
    for cand in range(N, 0, -1):
        if N % cand == 0 and cand * H <= 1024:
            NB = cand
            break

    def tile_bytes(nb):
        w_b = KH * KBp * TN * 2                               # resident weight (bf16)
        x_b = 2 * nb * (H + 2) * KBp * 2                      # double-buffered input
        o_b = 2 * nb * H * TN * 4                             # double-buffered output
        tmp = nb * H * (KBp * 2 + 2 * TN * 4)                 # lhs slice + acc temporaries
        return w_b + x_b + o_b + tmp + TN * 4

    budget = 24 * 1024 * 1024                                 # safe even on v7x (64 MiB VMEM)
    while NB > 1 and tile_bytes(NB) > budget:
        nb2 = NB - 1
        while nb2 > 1 and N % nb2 != 0:
            nb2 -= 1
        NB = nb2

    # ---- operands ----
    w_band = jnp.asarray(_build_band_weight(wf, TW, KBp)).astype(jnp.bfloat16)  # (KH,KBp,TN)
    bias_t = jnp.asarray(np.tile(bias_np, TW).reshape(1, 1, TN))                # (1,1,TN) f32

    # Input prep: NCHW -> zero-padded channel-minor windows (Wt, N, H+2, KBp), bf16.
    x_nhwc = jnp.transpose(x_nchw, (0, 2, 3, 1))
    xp = jnp.pad(x_nhwc, ((0, 0), (1, 1), (1, 1), (0, 0)))                      # (N,H+2,W+2,C)
    xp_flat = xp.reshape(N, H + 2, (W + 2) * C)
    xwin = jnp.stack(
        [xp_flat[:, :, j * TW * C: j * TW * C + KB] for j in range(Wt)], axis=0)
    if KBp > KB:
        xwin = jnp.pad(xwin, ((0, 0), (0, 0), (0, 0), (0, KBp - KB)))
    xwin = xwin.astype(jnp.bfloat16)                                            # (Wt,N,H+2,KBp)

    grid = (Wt, N // NB)
    flops = 2 * N * H * Wt * KH * KBp * TN
    bytes_accessed = xwin.size * 2 + w_band.size * 2 + Wt * N * H * TN * 4 + TN * 4
    cost = pl.CostEstimate(flops=flops, transcendentals=0, bytes_accessed=bytes_accessed)

    out = pl.pallas_call(
        functools.partial(_hfrfc_kernel, KH=KH, H=H),
        out_shape=jax.ShapeDtypeStruct((Wt, N, H, TN), jnp.float32),
        grid=grid,
        in_specs=[
            pl.BlockSpec((None, NB, H + 2, KBp), lambda j, n: (j, n, 0, 0)),
            pl.BlockSpec((KH, KBp, TN), lambda j, n: (0, 0, 0)),   # constant -> resident
            pl.BlockSpec((1, 1, TN), lambda j, n: (0, 0, 0)),
        ],
        out_specs=pl.BlockSpec((None, NB, H, TN), lambda j, n: (j, n, 0, 0)),
        compiler_params=pltpu.CompilerParams(
            dimension_semantics=("parallel", "parallel"),
            vmem_limit_bytes=int(min(48 * 1024 * 1024,
                                     max(16 * 1024 * 1024, 2 * tile_bytes(NB)))),
        ),
        cost_estimate=cost,
    )(xwin, w_band, bias_t)

    # (Wt, N, H, TW*Cout) -> NCHW
    out = out.reshape(Wt, N, H, TW, Cout)
    out = jnp.transpose(out, (1, 4, 2, 0, 3)).reshape(N, Cout, H, W)
    return out


def reference(x_nchw, w_oihw, gamma, beta, run_mean, run_var, eps=1e-5):
    """Pure JAX/numpy reference replicating the PyTorch forward (inference-mode BN)."""
    C = x_nchw.shape[1]
    x_np = np.asarray(x_nchw)
    xf = np.fft.fft(x_np, axis=1)
    xf[:, :C // 4] = 0
    xr = jnp.asarray(np.real(np.fft.ifft(xf, axis=1)).astype(np.float32))
    y = jax.lax.conv_general_dilated(
        xr, w_oihw, window_strides=(1, 1), padding="SAME",
        dimension_numbers=("NCHW", "OIHW", "NCHW"),
        precision=jax.lax.Precision.HIGHEST)
    scale = gamma / jnp.sqrt(run_var + eps)
    bias = beta - run_mean * scale
    y = y * scale[None, :, None, None] + bias[None, :, None, None]
    return jnp.maximum(y, 0.0)


if __name__ == "__main__":
    key = jax.random.PRNGKey(0)
    kx, kw, kg, kb, km, kv = jax.random.split(key, 6)

    N, C, H, W = 2, 8, 16, 16       # in_channels=8
    Cout = 16                       # out_channels=16

    x = jax.random.normal(kx, (N, C, H, W), jnp.float32)
    w = jax.random.normal(kw, (Cout, C, 3, 3), jnp.float32) / np.sqrt(C * 9)
    gamma = 1.0 + 0.1 * jax.random.normal(kg, (Cout,), jnp.float32)
    beta = 0.1 * jax.random.normal(kb, (Cout,), jnp.float32)
    run_mean = 0.1 * jax.random.normal(km, (Cout,), jnp.float32)
    run_var = jax.random.uniform(kv, (Cout,), jnp.float32, 0.5, 1.5)

    T = _freq_filter_matrix(C)

    out = jax.block_until_ready(hfrfc_block(x, T, w, gamma, beta, run_mean, run_var))
    ref = jax.block_until_ready(reference(x, w, gamma, beta, run_mean, run_var))

    np.testing.assert_allclose(np.asarray(out), np.asarray(ref), rtol=2e-2, atol=2e-2)
    print("KERNEL_OK")
</pallas_src>

<mosaic_0001>
module attributes {stable_mosaic.version = 11 : i64} {
  func.func @_hfrfc_kernel(%arg0: i32, %arg1: i32, %arg2: memref<1x2x18x128xbf16, #tpu.memory_space<vmem>>, %arg3: memref<3x128x128xbf16, #tpu.memory_space<vmem>>, %arg4: memref<1x1x128xf32, #tpu.memory_space<vmem>>, %arg5: memref<1x2x16x128xf32, #tpu.memory_space<vmem>>) attributes {dimension_semantics = [#tpu.dimension_semantics<parallel>, #tpu.dimension_semantics<parallel>], iteration_bounds = array<i64: 2, 1>, scalar_prefetch = 0 : i64, scratch_operands = 0 : i64, tpu.core_type = #tpu.core_type<tc>, window_params = [{transform_indices = @transform_0, window_bounds = array<i64: 1, 2, 18, 128>}, {pipeline_mode = #tpu.pipeline_mode<synchronous>, transform_indices = @transform_1, window_bounds = array<i64: 3, 128, 128>}, {pipeline_mode = #tpu.pipeline_mode<synchronous>, transform_indices = @transform_2, window_bounds = array<i64: 1, 1, 128>}, {transform_indices = @transform_3, window_bounds = array<i64: 1, 2, 16, 128>}]} {
    %c0 = arith.constant 0 : index
    %c0_0 = arith.constant 0 : index
    %c0_1 = arith.constant 0 : index
    %c0_2 = arith.constant 0 : index
    %0 = vector.load %arg2[%c0, %c0_0, %c0_1, %c0_2] : memref<1x2x18x128xbf16, #tpu.memory_space<vmem>>, vector<1x2x16x128xbf16>
    %1 = vector.shape_cast %0 : vector<1x2x16x128xbf16> to vector<2x16x128xbf16>
    %c0_3 = arith.constant 0 : index
    %c0_4 = arith.constant 0 : index
    %c0_5 = arith.constant 0 : index
    %2 = vector.load %arg3[%c0_3, %c0_4, %c0_5] : memref<3x128x128xbf16, #tpu.memory_space<vmem>>, vector<1x128x128xbf16>
    %3 = vector.shape_cast %2 : vector<1x128x128xbf16> to vector<128x128xbf16>
    %cst = arith.constant dense<0.000000e+00> : vector<2x16x128xf32>
    %4 = tpu.matmul %1, %3, %cst {dimension_numbers = #tpu.dot_dimension_numbers<[2], [0], [0, 1], [1], [0, 0, 0, 1, 1, 1], [], []>} : vector<2x16x128xbf16>, vector<128x128xbf16>, vector<2x16x128xf32> -> vector<2x16x128xf32>
    %c0_6 = arith.constant 0 : index
    %c0_7 = arith.constant 0 : index
    %c1 = arith.constant 1 : index
    %c0_8 = arith.constant 0 : index
    %5 = vector.load %arg2[%c0_6, %c0_7, %c1, %c0_8] : memref<1x2x18x128xbf16, #tpu.memory_space<vmem>>, vector<1x2x16x128xbf16>
    %6 = vector.shape_cast %5 : vector<1x2x16x128xbf16> to vector<2x16x128xbf16>
    %c1_9 = arith.constant 1 : index
    %c0_10 = arith.constant 0 : index
    %c0_11 = arith.constant 0 : index
    %7 = vector.load %arg3[%c1_9, %c0_10, %c0_11] : memref<3x128x128xbf16, #tpu.memory_space<vmem>>, vector<1x128x128xbf16>
    %8 = vector.shape_cast %7 : vector<1x128x128xbf16> to vector<128x128xbf16>
    %cst_12 = arith.constant dense<0.000000e+00> : vector<2x16x128xf32>
    %9 = tpu.matmul %6, %8, %cst_12 {dimension_numbers = #tpu.dot_dimension_numbers<[2], [0], [0, 1], [1], [0, 0, 0, 1, 1, 1], [], []>} : vector<2x16x128xbf16>, vector<128x128xbf16>, vector<2x16x128xf32> -> vector<2x16x128xf32>
    %10 = arith.addf %4, %9 : vector<2x16x128xf32>
    %c0_13 = arith.constant 0 : index
    %c0_14 = arith.constant 0 : index
    %c2 = arith.constant 2 : index
    %c0_15 = arith.constant 0 : index
    %11 = vector.load %arg2[%c0_13, %c0_14, %c2, %c0_15] : memref<1x2x18x128xbf16, #tpu.memory_space<vmem>>, vector<1x2x16x128xbf16>
    %12 = vector.shape_cast %11 : vector<1x2x16x128xbf16> to vector<2x16x128xbf16>
    %c2_16 = arith.constant 2 : index
    %c0_17 = arith.constant 0 : index
    %c0_18 = arith.constant 0 : index
    %13 = vector.load %arg3[%c2_16, %c0_17, %c0_18] : memref<3x128x128xbf16, #tpu.memory_space<vmem>>, vector<1x128x128xbf16>
    %14 = vector.shape_cast %13 : vector<1x128x128xbf16> to vector<128x128xbf16>
    %cst_19 = arith.constant dense<0.000000e+00> : vector<2x16x128xf32>
    %15 = tpu.matmul %12, %14, %cst_19 {dimension_numbers = #tpu.dot_dimension_numbers<[2], [0], [0, 1], [1], [0, 0, 0, 1, 1, 1], [], []>} : vector<2x16x128xbf16>, vector<128x128xbf16>, vector<2x16x128xf32> -> vector<2x16x128xf32>
    %16 = arith.addf %10, %15 : vector<2x16x128xf32>
    %c0_20 = arith.constant 0 : index
    %c0_21 = arith.constant 0 : index
    %c0_22 = arith.constant 0 : index
    %17 = vector.load %arg4[%c0_20, %c0_21, %c0_22] : memref<1x1x128xf32, #tpu.memory_space<vmem>>, vector<1x1x128xf32>
    %18 = vector.broadcast %17 : vector<1x1x128xf32> to vector<2x16x128xf32>
    %19 = arith.addf %16, %18 : vector<2x16x128xf32>
    %cst_23 = arith.constant 0.000000e+00 : f32
    %20 = vector.broadcast %cst_23 : f32 to vector<2x16x128xf32>
    %21 = arith.maximumf %19, %20 : vector<2x16x128xf32>
    %c0_24 = arith.constant 0 : index
    %c0_25 = arith.constant 0 : index
    %c0_26 = arith.constant 0 : index
    %c0_27 = arith.constant 0 : index
    %22 = vector.load %arg5[%c0_24, %c0_25, %c0_26, %c0_27] : memref<1x2x16x128xf32, #tpu.memory_space<vmem>>, vector<1x2x16x128xf32>
    %23 = vector.shape_cast %22 : vector<1x2x16x128xf32> to vector<2x16x128xf32>
    %24 = vector.shape_cast %21 : vector<2x16x128xf32> to vector<1x2x16x128xf32>
    tpu.vector_store %arg5[%c0_24, %c0_25, %c0_26, %c0_27], %24 {strides = array<i32>} : memref<1x2x16x128xf32, #tpu.memory_space<vmem>>, vector<1x2x16x128xf32>,
    return
  }
  func.func @transform_0(%arg0: i32, %arg1: i32) -> (i32, i32, i32, i32) {
    %c0_i32 = arith.constant 0 : i32
    %c0_i32_0 = arith.constant 0 : i32
    %c0_i32_1 = arith.constant 0 : i32
    return %arg0, %arg1, %c0_i32, %c0_i32_0 : i32, i32, i32, i32
  }
  func.func @transform_1(%arg0: i32, %arg1: i32) -> (i32, i32, i32) {
    %c0_i32 = arith.constant 0 : i32
    %c0_i32_0 = arith.constant 0 : i32
    %c0_i32_1 = arith.constant 0 : i32
    %c0_i32_2 = arith.constant 0 : i32
    return %c0_i32, %c0_i32_0, %c0_i32_1 : i32, i32, i32
  }
  func.func @transform_2(%arg0: i32, %arg1: i32) -> (i32, i32, i32) {
    %c0_i32 = arith.constant 0 : i32
    %c0_i32_0 = arith.constant 0 : i32
    %c0_i32_1 = arith.constant 0 : i32
    %c0_i32_2 = arith.constant 0 : i32
    return %c0_i32, %c0_i32_0, %c0_i32_1 : i32, i32, i32
  }
  func.func @transform_3(%arg0: i32, %arg1: i32) -> (i32, i32, i32, i32) {
    %c0_i32 = arith.constant 0 : i32
    %c0_i32_0 = arith.constant 0 : i32
    %c0_i32_1 = arith.constant 0 : i32
    return %arg0, %arg1, %c0_i32, %c0_i32_0 : i32, i32, i32, i32
  }
}

</mosaic_0001>

<bundles_post_ra>
// kernel: tpu_custom_call.1
= control target key start
LH: loop header
LB: loop body
LE: loop exit
PB: predicated region body
PF: predicated region fallthrough
CT: control target
= control target key end

     0   :  { %8 = vsyncpa [#allocation3], 0  ;;  %s1376_s0 = inlined_call_operand.vmem [shape: bf16[2,2,18,128], index: 0, kind: input, shape index: {}]   ;;  %s1377_s1 = inlined_call_operand.hbm [shape: bf16[3,128,128], index: 1, kind: input, shape index: {}]   ;;  %s1378_s2 = inlined_call_operand.vmem [shape: f32[1,1,128], index: 2, kind: input, shape index: {}]   ;;  %s1379_s3 = inlined_call_operand.hbm [shape: f32[2,2,16,128], index: 3, kind: output, shape index: {}]  }
   0x1   :  { %9 = vsyncpa [#allocation4], 0 }
   0x2   :  { %11 = vsyncpa [#allocation4 + $0x1], 0  ;;  %s1171_s12 = smov 0   ;;  %s1173_s13 = smov 0  }
   0x3   :  { %s1175_s14 = smov 0   ;;  %s1177_s15 = smov 0  }
   0x4   :  { %s1179_s16 = smov 0   ;;  %s1181_s17 = smov 0  }
   0x5 LB: > { %s802_s18 = sadd.s32 4294967295, %s1143_s17   ;;  %s803_s19 = sadd.s32 4294967294, %s1143_s17   ;;  %s1143_s17 = sphi %s1181_s17, %s17_s17   ;;  %s1139_s16 = sphi %s1179_s16, %s1392_s16   ;;  %s1135_s15 = sphi %s1177_s15, %s1391_s15   ;;  %s1131_s14 = sphi %s1175_s14, %s1390_s14   ;;  %s1127_s13 = sphi %s1173_s13, %s1389_s13   ;;  %s1123_s12 = sphi %s1171_s12, %s1388_s12  }
   0x6   : > { %s29_s20 = sadd.s32 1, %s1139_s16  ;;  %s108_s21 = sadd.s32 1, %s1131_s14 }
   0x7   : > { %p31_p0 = scmp.ge.s32.totalorder %s29_s20, 2  ;;  %p118_p1 = scmp.ne.s32.totalorder %s1131_s14, %s1127_s13 }
   0x8   : > { %p119_p2 = scmp.eq.s32.totalorder %s802_s18, 1  ;;  %p124_p3 = scmp.ne.s32.totalorder %s1127_s13, %s1123_s12 }
   0x9   : > { %s1394_s20 = smov (%p31_p0, %s29_s20), 0  ;;  %p125_p5 = scmp.eq.s32.totalorder %s803_s19, 1 }
   0xa   : > { %p1211_p4 = por %p119_p2, %p118_p1  ;;  %s103_s23 = ssub.s32 %s1139_s16, %s1394_s20 }
   0xb   : > { %p804_p6 = scmp.ge.s32.totalorder %s1143_s17, 1  ;;  %p106_p7 = scmp.eq.s32.totalorder %s103_s23, 0 }
   0xc   : > { %p1218_p8 = por %p125_p5, %p124_p3  ;;  %p132_p9 = scmp.lt.s32.totalorder %s1143_s17, 3 }
   0xd   : > { %s1224_s25 = scalar_select %p106_p7, %s1131_s14, %s108_s21  }
   0xe   : > { %p1226_p10 = pnand %p804_p6, %p132_p9  ;;  %p1230_p11 = scmp.eq.s32.totalorder %s802_s18, 0 }
   0xf   : > { %s1145_s28 = smov [#allocation2]  }
  0x10   : > { %p947_p12 = pneg %p1226_p10  ;;  %s144_s29 = sshll.u32 %s1145_s28, 4  ;;  %s145_s29 = int_to_ptr.vmem [resolvable:$true] %s144_s29 }
  0x11   : > { %s1048_s30 = scalar_lea.vmem %s145_s29, 3072  ;;  %p1056_p5 = scmp.lt.s32.totalorder %s145_s29, %s145_s29 }
  0x12   : > { %p948_p13 = pnand %p1230_p11, %p947_p12  ;;  %p1049_p1 = scmp.ne.s32.totalorder %s145_s29, %s1048_s30 }
  0x13   : > { %p1057_p6 = scmp.lt.s32.totalorder %s1048_s30, %s1048_s30 }
  0x14   : > { %p1039_p0 = pneg %p948_p13 }
  0x15   : > { %p1058_p7 = por %p1057_p6, %p1056_p5 }
  0x16   : > { %p1051_p2 = pnand %p1049_p1, %p1039_p0 }
  0x18   : > { %p1052_p3 = pneg %p1051_p2 }
  0x1a   : > { %p1059_p9 = pnand %p1058_p7, %p1052_p3 }
  0x1c   : > { %1062 = shalt.err (!%p1059_p9)
}
  0x1d   : > { %s1146_s4 = smov 64   ;;  %s1147_s5 = smov 4  }
  0x1e   : > { %950 = dma.hbm_to_vmem [thread:$0]  (!%p948_p13), %s1377_s1, 3072, %s145_s29, [#allocation3], %s1146_s4, %s1146_s4, %s1147_s5  }
  0x1f   : > { %177 = sbr.rel (%p1226_p10) target bundleno = 321 (0x141), region = 32 }
  0x24   : > { %1114 = dma.done.wait (%p1230_p11), [#allocation3], 3072  }
  0x25   : > { %1116 = vsyncadd (%p1230_p11), [#allocation3], 4294964224  ;;  %v1011_v0 = vld [vmem:[#allocation2 + $0x78] sm:$0xff]   ;;  %p207_p12 = scmp.lt.s32.totalorder %s1135_s15, 1  ;;  %v1013_v2 = vld [vmem:[#allocation2 + $0x70] sm:$0xff]   ;;  %vm546_vm3 = vcmask 1042432  }
  0x26   : > { %v1012_v1 = vld [vmem:[#allocation2 + $0x38] sm:$0xff]   ;;  %880 = vmatprep.subr.bf16.mxu0 %v1011_v0  ;;  %v1014_v3 = vld [vmem:[#allocation2 + $0x30] sm:$0xff]   ;;  %v1015_v4 = vld [vmem:[#allocation2 + $0x68] sm:$0xff]   ;;  %vm258_vm0 = vsmask.f32 3328  ;;  %vm547_vm4 = vcmask 1046532  }
  0x27   : > { %900 = vmatprep.subr.bf16.mxu1 %v1012_v1  ;;  %881 = vmatpush3.bf16.msra.mxu0 %v1011_v0  ;;  %v1016_v5 = vld [vmem:[#allocation2 + $0x28] sm:$0xff]   ;;  %s208_s8 = scalar_select %p207_p12, %s1135_s15, 1  ;;  %v1017_v6 = vld [vmem:[#allocation2 + $0x60] sm:$0xff]   ;;  %vm259_vm1 = vsmask.f32 7440  ;;  %v1019_v8 = vld [vmem:[#allocation2 + $0x58] sm:$0xff]  }
  0x28   : > { %901 = vmatpush3.bf16.msra.mxu1 %v1012_v1  ;;  %882 = vmatprep.subr.bf16.mxu0 %v1013_v2  ;;  %v1018_v7 = vld [vmem:[#allocation2 + $0x20] sm:$0xff]   ;;  %v1020_v9 = vld [vmem:[#allocation2 + $0x18] sm:$0xff]   ;;  %v1021_v10 = vld [vmem:[#allocation2 + $0x50] sm:$0xff]   ;;  %s203_s19 = sand.u32 1, %s1127_s13   ;;  %s849_s29 = sshll.u32 %s1135_s15, 9 }
  0x29   : > { %902 = vmatprep.subr.bf16.mxu1 %v1014_v3  ;;  %s940_s9 = smul.u32 24, %s208_s8  ;;  %v1022_v11 = vld [vmem:[#allocation2 + $0x10] sm:$0xff]   ;;  %v1023_v20 = vld [vmem:[#allocation2 + $0x48] sm:$0xff]   ;;  %vm1281_vm2 = vmor %vm258_vm0, %vm259_vm1  ;;  %s809_s26 = sshll.u32 %s203_s19, 5 }
  0x2a   : > { %v1024_v33 = vld [vmem:[#allocation2 + $0x8] sm:$0xff]   ;;  %v1025_v45 = vld [vmem:[#allocation2 + $0x40] sm:$0xff]   ;;  %vm1293_vm5 = vmor %vm546_vm3, %vm547_vm4  ;;  %s205_s27 = scalar_lea.vmem [#allocation5], %s809_s26  ;;  %s1327_s5 = scalar_lea.hbm %s1379_s3, %s849_s29 }
  0x2b   : > { %883 = vmatpush3.bf16.msra.mxu0 %v1013_v2  ;;  %s1252_s18 = scalar_lea.vmem %s1376_s0, %s940_s9  ;;  %v1026_v48 = vld [vmem:[#allocation2] sm:$0xff]   ;;  %v1029_v59 = vld [vmem:[#allocation2 + $0xb8] sm:$0xff]   ;;  %s708_s28 = sshll.u32 %s205_s27, 4  ;;  %s1322_s28 = int_to_ptr.vmem [resolvable:$true] %s708_s28 }
  0x2c   : > { %903 = vmatpush3.bf16.msra.mxu1 %v1014_v3  ;;  %884 = vmatprep.subr.bf16.mxu0 %v1015_v4  ;;  %v219_v12 = vld [vmem:[%s1252_s18] sm:$0xf]  ;;  %v1256_v13 = vld [vmem:[%s1252_s18 + $0x4] sm:$0xf]  ;;  %v1259_v14 = vld [vmem:[%s1252_s18 + $0x8] sm:$0x1] }
  0x2d   : > { %904 = vmatprep.subr.bf16.mxu1 %v1016_v5  ;;  %v262_v15 = vshrl.u32 %v219_v12, 16  ;;  %v265_v16 = vshll.u32 %v219_v12, 16  ;;  %v271_v17 = vshll.u32 %v1256_v13, 16  ;;  %v275_v18 = vshrl.u32 %v1256_v13, 16  ;;  %v1264_v19 = vld [vmem:[%s1252_s18 + $0xc] sm:$0xf] }
  0x2e   : > { %v281_v21 = vshll.u32 %v1259_v14, 16  ;;  %v821_v22 = vcombine.low %v219_v12, %v1256_v13  ;;  %v1269_v23 = vld [vmem:[%s1252_s18 + $0x10] sm:$0xf]  ;;  %v1272_v24 = vld [vmem:[%s1252_s18 + $0x14] sm:$0x1]  ;;  %v286_v30 = vshrl.u32 %v1264_v19, 16 }
  0x2f   : > { %885 = vmatpush3.bf16.msra.mxu0 %v1015_v4  ;;  %v264_v25 = vrot.slane %v262_v15, 4  ;;  %v267_v26 = vrot.slane %v265_v16, 5  ;;  %v273_v27 = vrot.slane %v271_v17, 5  ;;  %v277_v28 = vrot.slane %v275_v18, 4  ;;  %v523_v62 = vld [vmem:[%s1252_s18] sm:$0xe] }
  0x30   : > { %905 = vmatpush3.bf16.msra.mxu1 %v1016_v5  ;;  %886 = vmatprep.subr.bf16.mxu0 %v1017_v6  ;;  %v283_v29 = vrot.slane %v281_v21, 5  ;;  %v289_v31 = vshll.u32 %v1264_v19, 16  ;;  %v295_v32 = vshll.u32 %v1269_v23, 16  ;;  %v299_v36 = vshrl.u32 %v1269_v23, 16  ;;  %v1030_v3 = vld [vmem:[#allocation2 + $0xb0] sm:$0xff]   ;;  %v1036_v16 = vld [vmem:[#allocation2 + $0x80] sm:$0xff]  }
  0x31   : > { %906 = vmatprep.subr.bf16.mxu1 %v1018_v7  ;;  %v268_v34 = vor.u32 %v267_v26, %v264_v25  ;;  %v278_v35 = vor.u32 %v277_v28, %v273_v27  ;;  %916 = vmatprep.mubr.bf16.mxu1 %v821_v22  ;;  %v305_v37 = vshll.u32 %v1272_v24, 16  ;;  %v288_v39 = vrot.slane %v286_v30, 4  ;;  %v524_v12 = vld [vmem:[%s1252_s18 + $0xc] sm:$0xe]  ;;  %s1331_s6 = scalar_lea.sflag [#allocation4], %s203_s19  ;;  %s1063_s15 = scalar_lea.vmem %s1322_s28, 512 }
  0x32   : > { %v291_v40 = vrot.slane %v289_v31, 5  ;;  %v297_v41 = vrot.slane %v295_v32, 5  ;;  %v301_v44 = vrot.slane %v299_v36, 4  ;;  %v551_v47 = vrot.slane %v1256_v13, 5  ;;  %p1064_p10 = scmp.ne.s32.totalorder %s1322_s28, %s1063_s15  ;;  %s1148_s7 = smov [#allocation5]  }
  0x33   : > { %887 = vmatpush3.bf16.msra.mxu0 %v1017_v6  ;;  %v269_v42 = vrot.slane %v268_v34, 4  ;;  %v279_v43 = vrot.slane %v278_v35, 4  ;;  %v307_v52 = vrot.slane %v305_v37, 5  ;;  %v554_v54 = vrot.slane %v1259_v14, 5  ;;  %v1031_v6 = vld [vmem:[#allocation2 + $0xa8] sm:$0xff]   ;;  %s1067_s8 = sshll.u32 %s1148_s7, 4  ;;  %s1068_s8 = int_to_ptr.vmem [resolvable:$false] %s1067_s8 }
  0x34   : > { %907 = vmatpush3.bf16.msra.mxu1 %v1018_v7  ;;  %888 = vmatprep.subr.bf16.mxu0 %v1019_v8  ;;  %v292_v46 = vor.u32 %v291_v40, %v288_v39  ;;  %v302_v51 = vor.u32 %v301_v44, %v297_v41  ;;  %v553_v60 = vrot.slane %v551_v47, 4  ;;  %v831_v0 = vrot.slane %v523_v62, 9  ;;  %v1032_v7 = vld [vmem:[#allocation2 + $0xa0] sm:$0xff]   ;;  %p1065_p11 = pnand %p1064_p10, %p1211_p4  ;;  %s1069_s9 = scalar_lea.vmem %s1068_s8, 1024 }
  0x35   : > { %908 = vmatprep.subr.bf16.mxu1 %v1020_v9  ;;  %v274_v49 = vsel %vm1281_vm2, %v269_v42, %v273_v27  ;;  %v284_v50 = vsel %vm1281_vm2, %v279_v43, %v283_v29  ;;  %v822_v2 = vcombine.low %v1264_v19, %v1269_v23  ;;  %v561_v13 = vrot.slane %v1272_v24, 5  ;;  %v843_v29 = vld [vmem:[%s1378_s2] ss:$0 sm:$0xff]  ;;  %p1070_p0 = scmp.lt.s32.totalorder %s1322_s28, %s1068_s8  ;;  %p1071_p1 = scmp.lt.s32.totalorder %s1069_s9, %s1063_s15 }
  0x36   : > { %v811_v53 = vcombine.low %v274_v49, %v284_v50  ;;  %v293_v55 = vrot.slane %v292_v46, 4  ;;  %v303_v56 = vrot.slane %v302_v51, 4  ;;  %v555_v1 = vsel %vm1293_vm5, %v553_v60, %v554_v54  ;;  %p1066_p13 = pneg %p1065_p11 }
  0x37   : > { %889 = vmatpush3.bf16.msra.mxu0 %v1019_v8  ;;  %v552_v4 = vsel %vm1293_vm5, %v831_v0, %v551_v47  ;;  %v1033_v8 = vld [vmem:[#allocation2 + $0x98] sm:$0xff]   ;;  %v832_v14 = vrot.slane %v524_v12, 9  ;;  %p1072_p2 = por %p1071_p1, %p1070_p0 }
  0x38   : > { %909 = vmatpush3.bf16.msra.mxu1 %v1020_v9  ;;  %890 = vmatprep.subr.bf16.mxu0 %v1021_v10  ;;  %v298_v58 = vsel %vm1281_vm2, %v293_v55, %v297_v41  ;;  %v308_v61 = vsel %vm1281_vm2, %v303_v56, %v307_v52  ;;  %v833_v5 = vcombine.low %v552_v4, %v555_v1  ;;  %v1034_v9 = vld [vmem:[#allocation2 + $0x90] sm:$0xff]  }
  0x39   : > { %910 = vmatprep.subr.bf16.mxu1 %v1022_v11  ;;  %896 = vmatprep.mubr.bf16.mxu0 %v811_v53  ;;  %v812_v63 = vcombine.low %v298_v58, %v308_v61  ;;  %p1073_p3 = pnand %p1072_p2, %p1066_p13 }
  0x3b   : > { %891 = vmatpush3.bf16.msra.mxu0 %v1021_v10  ;;  %v558_v10 = vrot.slane %v1269_v23, 5 }
  0x3c   : > { %911 = vmatpush3.bf16.msra.mxu1 %v1022_v11  ;;  %892 = vmatprep.subr.bf16.mxu0 %v1023_v20  ;;  %v1035_v11 = vld [vmem:[#allocation2 + $0x88] sm:$0xff]  }
  0x3d   : > { %912 = vmatprep.subr.bf16.mxu1 %v1024_v33  ;;  %v560_v15 = vrot.slane %v558_v10, 4  ;;  %v559_v17 = vsel %vm1293_vm5, %v832_v14, %v558_v10 }
  0x3f   : > { %893 = vmatpush3.bf16.msra.mxu0 %v1023_v20  ;;  %v562_v18 = vsel %vm1293_vm5, %v560_v15, %v561_v13 }
  0x40   : > { %913 = vmatpush3.bf16.msra.mxu1 %v1024_v33  ;;  %894 = vmatprep.subr.bf16.mxu0 %v1025_v45  ;;  %v834_v19 = vcombine.low %v559_v17, %v562_v18 }
  0x41   : > { %914 = vmatprep.subr.bf16.mxu1 %v1026_v48 }
  0x43   : > { %895 = vmatpush3.bf16.msra.mxu0 %v1025_v45 }
  0x44   : > { %915 = vmatpush3.bf16.msra.mxu1 %v1026_v48  ;;  %920 = vmatprep.subr.bf16.mxu0 %v1029_v59 }
  0x46   : > { %897 = vmatmul.mubr.bf16.vlgmr.msra.gmra.mxu0 %v812_v63 }
  0x47   : > { %917 = vmatmul.mubr.bf16.vlgmr.msra.gmra.mxu1 %v822_v2  ;;  %921 = vmatpush3.bf16.msra.mxu0 %v1029_v59 }
  0x48   : > { %922 = vmatprep.subr.bf16.mxu0 %v1030_v3  ;;  %936 = vmatprep.mubr.bf16.mxu0 %v833_v5 }
  0x4b   : > { %923 = vmatpush3.bf16.msra.mxu0 %v1030_v3 }
  0x4c   : > { %924 = vmatprep.subr.bf16.mxu0 %v1031_v6 }
  0x4f   : > { %925 = vmatpush3.bf16.msra.mxu0 %v1031_v6 }
  0x50   : > { %926 = vmatprep.subr.bf16.mxu0 %v1032_v7 }
  0x53   : > { %927 = vmatpush3.bf16.msra.mxu0 %v1032_v7 }
  0x54   : > { %928 = vmatprep.subr.bf16.mxu0 %v1033_v8 }
  0x57   : > { %929 = vmatpush3.bf16.msra.mxu0 %v1033_v8 }
  0x58   : > { %930 = vmatprep.subr.bf16.mxu0 %v1034_v9 }
  0x5b   : > { %931 = vmatpush3.bf16.msra.mxu0 %v1034_v9 }
  0x5c   : > { %932 = vmatprep.subr.bf16.mxu0 %v1035_v11 }
  0x5f   : > { %933 = vmatpush3.bf16.msra.mxu0 %v1035_v11 }
  0x60   : > { %934 = vmatprep.subr.bf16.mxu0 %v1036_v16 }
  0x63   : > { %935 = vmatpush3.bf16.msra.mxu0 %v1036_v16 }
  0x66   : > { %937 = vmatmul.mubr.bf16.vlgmr.msra.gmra.mxu0 %v834_v19 }
 0x106   : > { %v898_v20 = vpop.f32.mrf.mxu0 }
 0x107   : > { %v918_v21 = vpop.f32.mrf.mxu1 }
 0x108   : > { %v399_v22 = vpop.f32.mrf.mxu0  ;;  %v517_v27 = vadd.f32 %v918_v21, %v898_v20 }
 0x109   : > { %v508_v23 = vpop.f32.mrf.mxu1 }
 0x10a   : > { %v899_v24 = vpop.f32.mrf.mxu0  ;;  %v509_v30 = vadd.f32 %v508_v23, %v399_v22 }
 0x10b   : > { %v919_v25 = vpop.f32.mrf.mxu1 }
 0x10c   : > { %v402_v26 = vpop.f32.mrf.mxu0  ;;  %v520_v34 = vadd.f32 %v919_v25, %v899_v24 }
 0x10d   : > { %v511_v32 = vpop.f32.mrf.mxu1 }
 0x10e   : > { %v512_v38 = vadd.f32 %v511_v32, %v402_v26 }
 0x126   : > { %v938_v28 = vpop.f32.mrf.mxu0 }
 0x127   : > { %v670_v31 = vadd.f32 %v938_v28, %v517_v27 }
 0x128   : > { %v653_v33 = vpop.f32.mrf.mxu0 }
 0x129   : > { %v681_v35 = vadd.f32 %v843_v29, %v670_v31  ;;  %v668_v36 = vadd.f32 %v653_v33, %v509_v30 }
 0x12a   : > { %v939_v37 = vpop.f32.mrf.mxu0 }
 0x12b   : > { %v685_v39 = vmax.f32 %v681_v35, 0.0  ;;  %v679_v40 = vadd.f32 %v843_v29, %v668_v36  ;;  %v671_v41 = vadd.f32 %v939_v37, %v520_v34 }
 0x12c   : > { %v656_v42 = vpop.f32.mrf.mxu0 }
 0x12d   : > { %689 = vst [vmem:[%s205_s27 + $0x10] sm:$0xff] %v685_v39  ;;  %v683_v43 = vmax.f32 %v679_v40, 0.0  ;;  %v682_v44 = vadd.f32 %v843_v29, %v671_v41  ;;  %v669_v45 = vadd.f32 %v656_v42, %v512_v38 }
 0x12f   : > { %687 = vst [vmem:[%s205_s27] sm:$0xff] %v683_v43  ;;  %v686_v46 = vmax.f32 %v682_v44, 0.0  ;;  %v680_v47 = vadd.f32 %v843_v29, %v669_v45 }
 0x131   : > { %690 = vst [vmem:[%s205_s27 + $0x18] sm:$0xff] %v686_v46  ;;  %v684_v48 = vmax.f32 %v680_v47, 0.0 }
 0x133   : > { %688 = vst [vmem:[%s205_s27 + $0x8] sm:$0xff] %v684_v48 }
 0x134   : > { %1076 = shalt.err (!%p1073_p3)
}
 0x135   : > { %s1077_s10 = scalar_lea.hbm %s1327_s5, 512  ;;  %s1081_s19 = scalar_lea.hbm %s1379_s3, 1024 }
 0x136   : > { %p1078_p5 = scmp.ne.s32.totalorder %s1327_s5, %s1077_s10  ;;  %p1082_p9 = scmp.lt.s32.totalorder %s1327_s5, %s1379_s3 }
 0x137   : > { %p1083_p12 = scmp.lt.s32.totalorder %s1081_s19, %s1077_s10 }
 0x138   : > { %p1079_p6 = pnand %p1078_p5, %p1211_p4 }
 0x139   : > { %p1084_p10 = por %p1083_p12, %p1082_p9 }
 0x13a   : > { %p1080_p7 = pneg %p1079_p6 }
 0x13c   : > { %p1085_p11 = pnand %p1084_p10, %p1080_p7 }
 0x13e   : > { %1088 = shalt.err (!%p1085_p11)
}
 0x13f   : > { %s1149_s26 = smov 128   ;;  %s1150_s27 = smov 8  }
 0x140   : > { %945 = dma.vmem_to_hbm [thread:$0]  (%p1211_p4), %s1322_s28, 512, %s1327_s5, %s1331_s6, %s1149_s26, %s1149_s26, %s1150_s27  }
 0x141 PF: > { %p957_p13 = scmp.ge.s32.totalorder %s1143_s17, 2  ;;  %s723_s29 = sand.u32 1, %s1123_s12  }
 0x142   : > { %s724_s30 = scalar_lea.sflag [#allocation4], %s723_s29 }
 0x143   : > { %p952_p0 = pnand %p957_p13, %p1218_p8 }
 0x145   : > { %p953_p1 = pneg %p952_p0 }
 0x147   : > { %1118 = dma.done.wait (%p953_p1), %s724_s30, 512  }
 0x148   : > { %1120 = vsyncadd (%p953_p1), %s724_s30, 4294966784  ;;  %s17_s17 = sadd.s32 1, %s1143_s17   ;;  %s1388_s12 = smov %s1127_s13 }
 0x149   : > { %p14_p2 = scmp.ge.s32.totalorder %s17_s17, 4   ;;  %s1389_s13 = smov %s1131_s14 }
 0x14a   : > { %s1390_s14 = smov %s1224_s25  ;;  %s1391_s15 = smov %s1139_s16 }
 0x14b   : > { %s1392_s16 = smov %s1394_s20  ;;  %16 = sbr.rel (!%p14_p2) target bundleno = 5 (0x5), region = 74 }
 0x150   :  { %729 = vsyncpa [#allocation3], 1 }
 0x151   :  { %731 = vsyncpa [#allocation3 + $0x1], 1 }
 0x152   :  { %732 = vsyncpa [#allocation4], 1 }
 0x153   :  { %734 = vsyncpa [#allocation4 + $0x1], 1 }

</bundles_post_ra>
